<compile_context>
chip_gen: v5e
topology: v5e:2x2
jax: 0.10.0
libtpu: 0.0.40
codegen_flags: <defaults>
</compile_context>

<pallas_src>
import math
import functools

import jax
import jax.numpy as jnp
import numpy as np
from jax.experimental import pallas as pl
from jax.experimental.pallas import tpu as pltpu

_MIB = 1 << 20


# ----------------------------------------------------------------------------
# helpers
# ----------------------------------------------------------------------------

def _pick_tile(dim, target, quantum):
    """Largest tile <= target that divides `dim` and is a multiple of `quantum`;
    falls back to the full dim (legal: block == full array dim).  Callers that
    can pad (pallas_linear) pad to a quantum multiple so the fallback never
    produces a huge block there."""
    if dim <= target:
        return dim
    t = min(target, dim)
    t -= t % quantum
    while t >= quantum:
        if dim % t == 0:
            return t
        t -= quantum
    # TODO(synk): for huge non-factorable seq dims, pad + mask instead of full-dim fallback.
    return dim


# ----------------------------------------------------------------------------
# tiled linear kernel:  o = x @ w + b      (bf16 MXU, f32 accumulate)
# ----------------------------------------------------------------------------

def _linear_kernel(x_ref, w_ref, b_ref, o_ref, acc_ref):
    kk = pl.program_id(2)

    @pl.when(kk == 0)
    def _init():
        acc_ref[...] = jnp.zeros_like(acc_ref)

    x = x_ref[...].astype(jnp.bfloat16)
    w = w_ref[...].astype(jnp.bfloat16)
    acc_ref[...] += jnp.dot(x, w, preferred_element_type=jnp.float32)

    @pl.when(kk == pl.num_programs(2) - 1)
    def _finalize():
        o_ref[...] = (acc_ref[...] + b_ref[...]).astype(o_ref.dtype)


def pallas_linear(x2d, w, b, *, out_dtype=None,
                  tm_target=512, tn_target=512, tk_target=512):
    """y = x2d @ w + b.  x2d: [M, K] (f32 or bf16), w: [K, N] (bf16), b: [N] (f32)."""
    M, K = x2d.shape
    N = w.shape[1]
    out_dtype = out_dtype or x2d.dtype

    qm = 16                       # sublane quantum that covers bf16 blocks
    m_pad = (-M) % qm
    if m_pad:
        x2d = jnp.pad(x2d, ((0, m_pad), (0, 0)))
    Mp = M + m_pad

    tm = _pick_tile(Mp, tm_target, qm)
    tn = _pick_tile(N, tn_target, 128)
    tk = _pick_tile(K, tk_target, 128)
    grid = (Mp // tm, N // tn, K // tk)

    # scoped-VMEM budget: double-buffered windows + f32 accumulator
    est = 2 * (tm * tk * jnp.dtype(x2d.dtype).itemsize
               + tk * tn * jnp.dtype(w.dtype).itemsize
               + tn * 4
               + tm * tn * jnp.dtype(out_dtype).itemsize) + tm * tn * 4
    vmem_limit = int(min(64 * _MIB, max(32 * _MIB, 2 * est)))

    out = pl.pallas_call(
        _linear_kernel,
        out_shape=jax.ShapeDtypeStruct((Mp, N), out_dtype),
        grid=grid,
        in_specs=[
            pl.BlockSpec((tm, tk), lambda i, j, k: (i, k)),
            pl.BlockSpec((tk, tn), lambda i, j, k: (k, j)),
            pl.BlockSpec((1, tn), lambda i, j, k: (0, j)),
        ],
        out_specs=pl.BlockSpec((tm, tn), lambda i, j, k: (i, j)),
        scratch_shapes=[pltpu.VMEM((tm, tn), jnp.float32)],
        compiler_params=pltpu.CompilerParams(
            dimension_semantics=("parallel", "parallel", "arbitrary"),
            vmem_limit_bytes=vmem_limit),
    )(x2d, w, b.reshape(1, N))
    return out[:M] if m_pad else out


# ----------------------------------------------------------------------------
# flash-style attention kernel (head-batched, online softmax over kv tiles)
# ----------------------------------------------------------------------------

def _attn_kernel(*refs, heads, head_dim, scale, mask_heads,
                 have_pb, have_pa, want_scores, exact_recip):
    n_in = 4 + int(have_pb) + int(have_pa)
    n_out = 1 + int(want_scores)
    in_refs = refs[:n_in]
    out_refs = refs[n_in:n_in + n_out]
    qh_sc, m_sc, l_sc, acc_sc = refs[n_in + n_out:]

    q_ref, k_ref, v_ref, mask_ref = in_refs[:4]
    nxt = 4
    pb_ref = pa_ref = None
    if have_pb:
        pb_ref = in_refs[nxt]; nxt += 1
    if have_pa:
        pa_ref = in_refs[nxt]; nxt += 1
    ctx_ref = out_refs[0]
    scores_ref = out_refs[1] if want_scores else None

    H, D = heads, head_dim
    ki = pl.program_id(2)

    @pl.when(ki == 0)
    def _init():
        # q relayout + softmax scale: once per q tile, cached in VMEM scratch.
        tq = q_ref.shape[1]
        q = q_ref[0].reshape(tq, H, D).astype(jnp.bfloat16)      # (tq, H, D)
        qh = pltpu.einshape("mhd->hmd", q)                       # (H, tq, D)
        if scale != 1.0:
            qh = qh * scale
        qh_sc[...] = qh.astype(qh_sc.dtype)
        m_sc[...] = jnp.full(m_sc.shape, -jnp.inf, dtype=m_sc.dtype)
        l_sc[...] = jnp.zeros_like(l_sc)
        acc_sc[...] = jnp.zeros_like(acc_sc)

    tk = k_ref.shape[1]
    kh = pltpu.einshape("mhd->hmd", k_ref[0].reshape(tk, H, D).astype(jnp.bfloat16))
    vh = pltpu.einshape("mhd->hmd", v_ref[0].reshape(tk, H, D).astype(jnp.bfloat16))

    # head-batched scores: bf16 MXU, f32 accumulate -> (H, tq, tk)
    s = jnp.einsum("hqd,hkd->hqk", qh_sc[...], kh,
                   preferred_element_type=jnp.float32)
    if have_pb:
        s = s + pb_ref[0]                       # softmax scale pre-folded in the wrapper
    if mask_heads > 1:
        s = s + mask_ref[0]
    else:
        s = s + mask_ref[0, 0]
    if have_pa:
        s = s + pa_ref[0]
    if want_scores:
        scores_ref[0] = s.astype(scores_ref.dtype)

    # online softmax update for all heads at once
    m_prev = m_sc[...]
    m_new = jnp.maximum(m_prev, jnp.max(s, axis=-1, keepdims=True))
    alpha = jnp.exp(m_prev - m_new)
    p = jnp.exp(s - m_new)
    # TODO(synk): dropout on attention probabilities is identity here (eval mode).
    l_sc[...] = alpha * l_sc[...] + jnp.sum(p, axis=-1, keepdims=True)
    acc_sc[...] = alpha * acc_sc[...] + jnp.einsum(
        "hqk,hkd->hqd", p.astype(jnp.bfloat16), vh,
        preferred_element_type=jnp.float32)
    m_sc[...] = m_new

    @pl.when(ki == pl.num_programs(2) - 1)
    def _finalize():
        if exact_recip:
            ctx = acc_sc[...] / l_sc[...]
        else:
            ctx = acc_sc[...] * pl.reciprocal(l_sc[...], approx=True)
        ctx_ref[0] = pltpu.einshape("hmd->mhd", ctx).astype(ctx_ref.dtype)


def pallas_attention(q5, k5, v5, mask, pb, pa, scale, heads, head_dim, *,
                     head_chunks=(0, 0, 0), want_scores=False, out_dtype=None,
                     tq_target=None, tk_target=None, exact_recip=False):
    """q5/k5/v5: [B, S, C, H, D] views (may all alias one fused [B,S,3,H,D] array);
    `head_chunks` picks which C-chunk holds q / k / v.  mask: [B|1, 1|H, Sq, Sk] f32;
    pb: [1, H, Sq, Sk] (softmax scale already folded) or None; pa: [B|1, H, Sq, Sk] or None."""
    B, Sq = q5.shape[0], q5.shape[1]
    Sk = k5.shape[1]
    H, D = heads, head_dim
    out_dtype = out_dtype or q5.dtype
    mask_b, mask_h = mask.shape[0], mask.shape[1]
    have_pb = pb is not None
    have_pa = pa is not None

    # Tile targets: shrink when several score-shaped [*,H,tq,tk] streams compete for VMEM/DMA
    # (critical on v7x's 64 MiB VMEM); otherwise 256 keeps the MXU fed and K/V re-reads low.
    n_heavy = int(want_scores) + int(have_pb) + int(have_pa) + int(mask_h > 1)
    if tq_target is None:
        tq_target = 128 if n_heavy >= 2 else 256
    if tk_target is None:
        tk_target = 128 if n_heavy >= 2 else 256
    tq = _pick_tile(Sq, tq_target, 8)      # sublane dim of score-shaped blocks
    tk = _pick_tile(Sk, tk_target, 128)    # lane dim of score-shaped blocks

    qc, kc, vc = head_chunks

    def q_map(chunk):
        def imap(b, qi, ki):
            return (b, qi, chunk, 0, 0)
        return imap

    def kv_map(chunk):
        def imap(b, qi, ki):
            return (b, ki, chunk, 0, 0)
        return imap

    def bcast_map(nb):
        def imap(b, qi, ki):
            return (b if nb > 1 else 0, 0, qi, ki)
        return imap

    in_specs = [
        pl.BlockSpec((1, tq, 1, H, D), q_map(qc)),
        pl.BlockSpec((1, tk, 1, H, D), kv_map(kc)),
        pl.BlockSpec((1, tk, 1, H, D), kv_map(vc)),
        pl.BlockSpec((1, mask_h, tq, tk), bcast_map(mask_b)),
    ]
    inputs = [q5, k5, v5, mask]
    if have_pb:
        in_specs.append(pl.BlockSpec((1, H, tq, tk), lambda b, qi, ki: (0, 0, qi, ki)))
        inputs.append(pb)
    if have_pa:
        in_specs.append(pl.BlockSpec((1, H, tq, tk), bcast_map(pa.shape[0])))
        inputs.append(pa)

    out_shapes = [jax.ShapeDtypeStruct((B, Sq, H, D), out_dtype)]
    out_specs = [pl.BlockSpec((1, tq, H, D), lambda b, qi, ki: (b, qi, 0, 0))]
    if want_scores:
        # f32 on purpose: residual-attention scores accumulate across layers.
        out_shapes.append(jax.ShapeDtypeStruct((B, H, Sq, Sk), jnp.float32))
        out_specs.append(pl.BlockSpec((1, H, tq, tk), lambda b, qi, ki: (b, 0, qi, ki)))

    kernel = functools.partial(
        _attn_kernel, heads=H, head_dim=D, scale=scale, mask_heads=mask_h,
        have_pb=have_pb, have_pa=have_pa, want_scores=want_scores,
        exact_recip=exact_recip)

    # scoped-VMEM budget from the actual block sizes (double-buffered) + scratch.
    it_q = jnp.dtype(q5.dtype).itemsize
    it_o = jnp.dtype(out_dtype).itemsize
    blk = (tq * H * D * it_q + 2 * tk * H * D * it_q
           + mask_h * tq * tk * 4
           + H * tq * tk * 4 * (int(have_pb) + int(have_pa) + int(want_scores))
           + tq * H * D * it_o)
    scratch = H * tq * (2 * D + 2 * 4 + 4 * D)
    vmem_limit = int(min(64 * _MIB, max(32 * _MIB, 2 * (2 * blk + scratch))))

    outs = pl.pallas_call(
        kernel,
        out_shape=tuple(out_shapes),
        grid=(B, Sq // tq, Sk // tk),
        in_specs=in_specs,
        out_specs=tuple(out_specs),
        scratch_shapes=[
            pltpu.VMEM((H, tq, D), jnp.bfloat16),   # scaled, head-major q tile
            pltpu.VMEM((H, tq, 1), jnp.float32),    # running max
            pltpu.VMEM((H, tq, 1), jnp.float32),    # running denominator
            pltpu.VMEM((H, tq, D), jnp.float32),    # running numerator (P @ V)
        ],
        compiler_params=pltpu.CompilerParams(
            dimension_semantics=("parallel", "parallel", "arbitrary"),
            vmem_limit_bytes=vmem_limit),
    )(*inputs)

    ctx = outs[0]
    scores = outs[1] if want_scores else None
    return ctx, scores


# ----------------------------------------------------------------------------
# Module wrapper
# ----------------------------------------------------------------------------

class MultiHeadedAttentionPallas:
    def __init__(self, hidden_size, heads_num, attention_head_size, dropout,
                 has_bias=True, with_scale=True, rng_key=None):
        self.hidden_size = hidden_size
        self.heads_num = heads_num
        self.per_head_size = attention_head_size
        self.with_scale = with_scale
        self.inner_hidden_size = heads_num * attention_head_size
        self.dropout = dropout  # TODO(synk): dropout is a no-op (eval mode)

        if rng_key is None:
            rng_key = jax.random.PRNGKey(0)
        keys = jax.random.split(rng_key, 8)

        def init_linear(kw, kb, fan_in, fan_out):
            bound = 1.0 / math.sqrt(fan_in)
            w = jax.random.uniform(kw, (fan_in, fan_out), jnp.float32, -bound, bound)
            if has_bias:
                b = jax.random.uniform(kb, (fan_out,), jnp.float32, -bound, bound)
            else:
                b = jnp.zeros((fan_out,), jnp.float32)
            return w, b

        N = self.inner_hidden_size
        wq, bq = init_linear(keys[0], keys[1], hidden_size, N)
        wk, bk = init_linear(keys[2], keys[3], hidden_size, N)
        wv, bv = init_linear(keys[4], keys[5], hidden_size, N)
        wo, bo = init_linear(keys[6], keys[7], N, hidden_size)
        # Fused QKV parameters: [hidden, 3*H*D] / [3*H*D]; weights live in bf16 (MXU dtype).
        self.w_qkv = jnp.concatenate([wq, wk, wv], axis=1).astype(jnp.bfloat16)
        self.b_qkv = jnp.concatenate([bq, bk, bv], axis=0)          # f32 (added in f32 acc)
        self.wo = wo.astype(jnp.bfloat16)
        self.bo = bo

    def __call__(self, key, value, query, mask, position_bias=None,
                 has_residual_attention=False, prev_attn=None):
        B, S, _ = query.shape
        H, D = self.heads_num, self.per_head_size
        N = H * D
        cdt = jnp.bfloat16   # activation compute dtype on the MXU

        if (key is query) and (value is query):
            # Self-attention: single fused QKV matmul; feed the result straight into the
            # attention kernel as a [B, S, 3, H, D] view -- no wrapper-side slice copies.
            qkv = pallas_linear(query.reshape(B * S, -1), self.w_qkv, self.b_qkv,
                                out_dtype=cdt)
            q5 = k5 = v5 = qkv.reshape(B, S, 3, H, D)
            chunks = (0, 1, 2)
        else:
            def proj(x, w, b):
                y = pallas_linear(x.reshape(-1, x.shape[-1]), w, b, out_dtype=cdt)
                return y.reshape(x.shape[0], x.shape[1], 1, H, D)
            q5 = proj(query, self.w_qkv[:, 0 * N:1 * N], self.b_qkv[0 * N:1 * N])
            k5 = proj(key,   self.w_qkv[:, 1 * N:2 * N], self.b_qkv[1 * N:2 * N])
            v5 = proj(value, self.w_qkv[:, 2 * N:3 * N], self.b_qkv[2 * N:3 * N])
            chunks = (0, 0, 0)

        scale = (1.0 / math.sqrt(float(D))) if self.with_scale else 1.0
        mask_f = mask.astype(jnp.float32)
        pb = None
        if position_bias is not None:
            pb = position_bias.astype(jnp.float32)
            if scale != 1.0:
                pb = pb * scale          # fold the softmax scale (q is pre-scaled in-kernel)
        pa = (prev_attn.astype(jnp.float32)
              if (has_residual_attention and prev_attn is not None) else None)

        ctx, scores = pallas_attention(q5, k5, v5, mask_f, pb, pa, scale, H, D,
                                       head_chunks=chunks,
                                       want_scores=has_residual_attention,
                                       out_dtype=cdt)

        out = pallas_linear(ctx.reshape(B * S, N), self.wo, self.bo,
                            out_dtype=jnp.float32)
        out = out.reshape(B, S, self.hidden_size)
        return out, (scores if has_residual_attention else None)


# ----------------------------------------------------------------------------
# Pure-JAX reference (f32, for correctness check)
# ----------------------------------------------------------------------------

def reference_forward(m, key, value, query, mask, position_bias=None,
                      has_residual_attention=False, prev_attn=None):
    B, S, _ = query.shape
    H, D = m.heads_num, m.per_head_size
    N = H * D
    w_qkv = m.w_qkv.astype(jnp.float32)
    wq, wk, wv = (w_qkv[:, i * N:(i + 1) * N] for i in range(3))
    bq, bk, bv = (m.b_qkv[i * N:(i + 1) * N] for i in range(3))

    def proj(x, w, b):
        bsz, slen, _ = x.shape
        y = x.reshape(bsz * slen, -1) @ w + b
        return y.reshape(bsz, slen, H, D).transpose(0, 2, 1, 3)

    q4, k4, v4 = proj(query, wq, bq), proj(key, wk, bk), proj(value, wv, bv)
    s = jnp.einsum("bhqd,bhkd->bhqk", q4, k4)
    if position_bias is not None:
        s = s + position_bias
    if m.with_scale:
        s = s / math.sqrt(float(D))
    s = s + mask.astype(s.dtype)
    if has_residual_attention and prev_attn is not None:
        s = s + prev_attn
    p = jax.nn.softmax(s, axis=-1)
    ctx = jnp.einsum("bhqk,bhkd->bhqd", p, v4)
    ctx = ctx.transpose(0, 2, 1, 3).reshape(B, S, N)
    out = ctx @ m.wo.astype(jnp.float32) + m.bo
    return out, (s if has_residual_attention else None)


# ----------------------------------------------------------------------------
# Main
# ----------------------------------------------------------------------------

if __name__ == "__main__":
    batch, seq, hidden = 2, 8, 32
    heads, head_size = 4, 8

    root = jax.random.PRNGKey(0)
    k_param, k_q, k_k, k_v, k_pb, k_pa = jax.random.split(root, 6)

    module = MultiHeadedAttentionPallas(
        hidden_size=hidden, heads_num=heads, attention_head_size=head_size,
        dropout=0.1, has_bias=True, with_scale=True, rng_key=k_param)

    query = jax.random.normal(k_q, (batch, seq, hidden), jnp.float32)
    key_in = jax.random.normal(k_k, (batch, seq, hidden), jnp.float32)
    value = jax.random.normal(k_v, (batch, seq, hidden), jnp.float32)

    causal = jnp.tril(jnp.ones((seq, seq), jnp.float32))
    mask_b1 = jnp.broadcast_to((1.0 - causal) * -10000.0, (batch, 1, seq, seq))
    mask_bh = jnp.broadcast_to((1.0 - causal) * -10000.0, (batch, heads, seq, seq))
    position_bias = 0.1 * jax.random.normal(k_pb, (1, heads, seq, seq), jnp.float32)
    prev_attn = 0.05 * jax.random.normal(k_pa, (batch, heads, seq, seq), jnp.float32)

    # Tolerance accounts for bf16 MXU operands (f32 accumulation) vs. the pure-f32 reference.
    def check(got, want, tol=3e-2):
        np.testing.assert_allclose(np.asarray(got), np.asarray(want), atol=tol, rtol=tol)

    # 1) cross-attention, [B,1,S,S] mask, position_bias, residual attention (prev_attn=None)
    out1, sc1 = module(key_in, value, query, mask_b1, position_bias=position_bias,
                       has_residual_attention=True, prev_attn=None)
    out1 = jax.block_until_ready(out1)
    sc1 = jax.block_until_ready(sc1)
    r_out1, r_sc1 = reference_forward(module, key_in, value, query, mask_b1,
                                      position_bias=position_bias,
                                      has_residual_attention=True, prev_attn=None)
    check(out1, r_out1)
    check(sc1, r_sc1)

    # 2) self-attention (fused, no-slice QKV path), per-head mask, residual attention w/ prev_attn
    out2, sc2 = module(query, query, query, mask_bh, position_bias=position_bias,
                       has_residual_attention=True, prev_attn=prev_attn)
    out2 = jax.block_until_ready(out2)
    sc2 = jax.block_until_ready(sc2)
    r_out2, r_sc2 = reference_forward(module, query, query, query, mask_bh,
                                      position_bias=position_bias,
                                      has_residual_attention=True, prev_attn=prev_attn)
    check(out2, r_out2)
    check(sc2, r_sc2)

    # 3) minimal path: no position_bias, no residual attention (no scores output materialized)
    out3, sc3 = module(key_in, value, query, mask_b1)
    out3 = jax.block_until_ready(out3)
    assert sc3 is None
    r_out3, _ = reference_forward(module, key_in, value, query, mask_b1)
    check(out3, r_out3)

    print("KERNEL_OK")
</pallas_src>

<mosaic_0001>
module attributes {stable_mosaic.version = 11 : i64} {
  func.func @_linear_kernel(%arg0: i32, %arg1: i32, %arg2: i32, %arg3: memref<16x32xf32, #tpu.memory_space<vmem>>, %arg4: memref<32x32xbf16, #tpu.memory_space<vmem>>, %arg5: memref<1x32xf32, #tpu.memory_space<vmem>>, %arg6: memref<16x32xbf16, #tpu.memory_space<vmem>>, %arg7: memref<16x32xf32, #tpu.memory_space<vmem>>) attributes {dimension_semantics = [#tpu.dimension_semantics<parallel>, #tpu.dimension_semantics<parallel>, #tpu.dimension_semantics<arbitrary>], iteration_bounds = array<i64: 1, 1, 1>, scalar_prefetch = 0 : i64, scratch_operands = 1 : i64, tpu.core_type = #tpu.core_type<tc>, window_params = [{transform_indices = @transform_0, window_bounds = array<i64: 16, 32>}, {transform_indices = @transform_1, window_bounds = array<i64: 32, 32>}, {transform_indices = @transform_2, window_bounds = array<i64: 1, 32>}, {transform_indices = @transform_3, window_bounds = array<i64: 16, 32>}]} {
    %c0_i32 = arith.constant 0 : i32
    %0 = arith.cmpi eq, %arg2, %c0_i32 : i32
    %1 = arith.extui %0 : i1 to i32
    %c0_i32_0 = arith.constant 0 : i32
    %2 = arith.cmpi ne, %1, %c0_i32_0 : i32
    scf.if %2 {
      %cst_10 = arith.constant 0.000000e+00 : f32
      %13 = vector.broadcast %cst_10 : f32 to vector<16x32xf32>
      %c0_11 = arith.constant 0 : index
      %c0_12 = arith.constant 0 : index
      %14 = vector.load %arg7[%c0_11, %c0_12] : memref<16x32xf32, #tpu.memory_space<vmem>>, vector<16x32xf32>
      tpu.vector_store %arg7[%c0_11, %c0_12], %13 {strides = array<i32>} : memref<16x32xf32, #tpu.memory_space<vmem>>, vector<16x32xf32>,
    } else {
    }
    %c0 = arith.constant 0 : index
    %c0_1 = arith.constant 0 : index
    %3 = vector.load %arg3[%c0, %c0_1] : memref<16x32xf32, #tpu.memory_space<vmem>>, vector<16x32xf32>
    %4 = arith.truncf %3 : vector<16x32xf32> to vector<16x32xbf16>
    %c0_2 = arith.constant 0 : index
    %c0_3 = arith.constant 0 : index
    %5 = vector.load %arg4[%c0_2, %c0_3] : memref<32x32xbf16, #tpu.memory_space<vmem>>, vector<32x32xbf16>
    %c0_4 = arith.constant 0 : index
    %c0_5 = arith.constant 0 : index
    %6 = vector.load %arg7[%c0_4, %c0_5] : memref<16x32xf32, #tpu.memory_space<vmem>>, vector<16x32xf32>
    %cst = arith.constant dense<0.000000e+00> : vector<16x32xf32>
    %7 = tpu.matmul %4, %5, %cst {dimension_numbers = #tpu.dot_dimension_numbers<[1], [0], [0], [1], [0, 0, 1, 1], [], []>} : vector<16x32xbf16>, vector<32x32xbf16>, vector<16x32xf32> -> vector<16x32xf32>
    %8 = arith.addf %6, %7 : vector<16x32xf32>
    %c0_6 = arith.constant 0 : index
    %c0_7 = arith.constant 0 : index
    %9 = vector.load %arg7[%c0_6, %c0_7] : memref<16x32xf32, #tpu.memory_space<vmem>>, vector<16x32xf32>
    tpu.vector_store %arg7[%c0_6, %c0_7], %8 {strides = array<i32>} : memref<16x32xf32, #tpu.memory_space<vmem>>, vector<16x32xf32>,
    %c0_i32_8 = arith.constant 0 : i32
    %10 = arith.cmpi eq, %arg2, %c0_i32_8 : i32
    %11 = arith.extui %10 : i1 to i32
    %c0_i32_9 = arith.constant 0 : i32
    %12 = arith.cmpi ne, %11, %c0_i32_9 : i32
    scf.if %12 {
      %c0_10 = arith.constant 0 : index
      %c0_11 = arith.constant 0 : index
      %13 = vector.load %arg7[%c0_10, %c0_11] : memref<16x32xf32, #tpu.memory_space<vmem>>, vector<16x32xf32>
      %c0_12 = arith.constant 0 : index
      %c0_13 = arith.constant 0 : index
      %14 = vector.load %arg5[%c0_12, %c0_13] : memref<1x32xf32, #tpu.memory_space<vmem>>, vector<1x32xf32>
      %15 = vector.broadcast %14 : vector<1x32xf32> to vector<16x32xf32>
      %16 = arith.addf %13, %15 : vector<16x32xf32>
      %17 = arith.truncf %16 : vector<16x32xf32> to vector<16x32xbf16>
      %c0_14 = arith.constant 0 : index
      %c0_15 = arith.constant 0 : index
      %18 = vector.load %arg6[%c0_14, %c0_15] : memref<16x32xbf16, #tpu.memory_space<vmem>>, vector<16x32xbf16>
      tpu.vector_store %arg6[%c0_14, %c0_15], %17 {strides = array<i32>} : memref<16x32xbf16, #tpu.memory_space<vmem>>, vector<16x32xbf16>,
    } else {
    }
    return
  }
  func.func @transform_0(%arg0: i32, %arg1: i32, %arg2: i32) -> (i32, i32) {
    %c0_i32 = arith.constant 0 : i32
    return %arg0, %arg2 : i32, i32
  }
  func.func @transform_1(%arg0: i32, %arg1: i32, %arg2: i32) -> (i32, i32) {
    %c0_i32 = arith.constant 0 : i32
    return %arg2, %arg1 : i32, i32
  }
  func.func @transform_2(%arg0: i32, %arg1: i32, %arg2: i32) -> (i32, i32) {
    %c0_i32 = arith.constant 0 : i32
    %c0_i32_0 = arith.constant 0 : i32
    return %c0_i32, %arg1 : i32, i32
  }
  func.func @transform_3(%arg0: i32, %arg1: i32, %arg2: i32) -> (i32, i32) {
    %c0_i32 = arith.constant 0 : i32
    return %arg0, %arg1 : i32, i32
  }
}

</mosaic_0001>

<bundles_post_ra>
// kernel: tpu_custom_call.1
= control target key start
LH: loop header
LB: loop body
LE: loop exit
PB: predicated region body
PF: predicated region fallthrough
CT: control target
= control target key end

     0   :  { %8 = vsyncpa [#allocation4], 0  ;;  %s283_s0 = inlined_call_operand.hbm [shape: f32[16,32], index: 0, kind: input, shape index: {}]   ;;  %s284_s1 = inlined_call_operand.hbm [shape: bf16[32,32], index: 1, kind: input, shape index: {}]   ;;  %s285_s2 = inlined_call_operand.vmem [shape: f32[1,32], index: 2, kind: input, shape index: {}]   ;;  %s286_s3 = inlined_call_operand.hbm [shape: bf16[16,32], index: 3, kind: output, shape index: {}]  }
   0x1   :  { %9 = vsyncpa [#allocation7], 0 }
   0x2   :  { %10 = vsyncpa [#allocation5], 0  ;;  %s15_s14 = sshll.u32 %s283_s0, 4  ;;  %s232_s15 = smov [#allocation3]   ;;  %s16_s14 = int_to_ptr.hbm [resolvable:$true] %s15_s14 }
   0x3   :  { %s17_s16 = sshll.u32 %s232_s15, 4  ;;  %s28_s19 = sshll.u32 %s284_s1, 4  ;;  %s18_s16 = int_to_ptr.vmem [resolvable:$true] %s17_s16  ;;  %s29_s19 = int_to_ptr.hbm [resolvable:$true] %s28_s19 }
   0x4   :  { %s233_s20 = smov 128   ;;  %s234_s21 = smov 8  }
   0x5   :  { %23 = dma.hbm_to_vmem [thread:$0]  %s16_s14, 256, %s18_s16, [#allocation4], %s233_s20, %s233_s20, %s234_s21  }
   0x6   :  { %s235_s22 = smov [#allocation6]   ;;  %s236_s24 = smov 64  }
   0x7   :  { %s30_s23 = sshll.u32 %s235_s22, 4  ;;  %s237_s25 = smov 4   ;;  %s31_s23 = int_to_ptr.vmem [resolvable:$true] %s30_s23 }
   0x8   :  { %36 = dma.hbm_to_vmem [thread:$0]  %s29_s19, 256, %s31_s23, [#allocation7], %s236_s24, %s236_s24, %s237_s25  }
   0x9   :  { %226 = dma.done.wait [#allocation4], 256  }
   0xa   :  { %227 = vsyncadd [#allocation4], 4294967040 }
   0xb   :  { %228 = dma.done.wait [#allocation7], 256  }
   0xc   :  { %229 = vsyncadd [#allocation7], 4294967040  ;;  %vm52_vm0 = vcmask 261120   ;;  %v238_v0 = vmov 0.0   ;;  %v144_v1 = vld [vmem:[#allocation6 + $0x8] sm:$0xff]  ;;  %v143_v2 = vld [vmem:[#allocation6] sm:$0xff] }
   0xd   :  { %53 = vst.msk [vmem:[#allocation2] sm:$0xff] %vm52_vm0, %v238_v0  ;;  %86 = vmatpush.bf16.msra.mxu0 %v144_v1  ;;  %v55_v3 = vld [vmem:[#allocation3] sm:$0xff]  ;;  %v56_v4 = vld [vmem:[#allocation3 + $0x8] sm:$0xff]  ;;  %v153_v10 = vld [vmem:[%s285_s2] ss:$0 sm:$0xff]  ;;  %vm111_vm1 = vcmask 257024  }
   0xe   :  { %54 = vst.msk [vmem:[#allocation2 + $0x8] sm:$0xff] %vm52_vm0, %v238_v0  ;;  %v57_v5 = vpack.c.bf16 %v56_v4, %v55_v3  ;;  %s239_s26 = smov [#allocation8]   ;;  %s120_s30 = sshll.u32 %s286_s3, 4  ;;  %s121_s30 = int_to_ptr.hbm [resolvable:$true] %s120_s30 }
   0xf   :  { %s118_s27 = sshll.u32 %s239_s26, 4  ;;  %s119_s27 = int_to_ptr.vmem [resolvable:$true] %s118_s27 }
  0x11   :  { %87 = vmatpush.bf16.msra.mxu0 %v143_v2 }
  0x14   :  { %142 = vmatmul.msk.bf16.vlgmr.msra.gmra.mxu0 %vm52_vm0, %v57_v5  ;;  %v62_v6 = vld [vmem:[#allocation2] sm:$0xff] }
  0x15   :  { %v63_v9 = vld [vmem:[#allocation2 + $0x8] sm:$0xff] }
  0x91   :  { %v89_v7 = vpop.f32.mrf.mxu0 }
  0x92   :  { %v94_v8 = vadd.f32 %v89_v7, %v62_v6 }
  0x94   :  { %96 = vst.msk [vmem:[#allocation2] sm:$0xff] %vm52_vm0, %v94_v8 }
  0x99   :  { %v91_v11 = vpop.f32.mrf.mxu0 }
  0x9a   :  { %v95_v12 = vadd.f32 %v91_v11, %v63_v9 }
  0x9b   :  { %v101_v13 = vld [vmem:[#allocation2] sm:$0xff] }
  0x9c   :  { %97 = vst.msk [vmem:[#allocation2 + $0x8] sm:$0xff] %vm52_vm0, %v95_v12  ;;  %v107_v14 = vadd.f32 %v153_v10, %v101_v13 }
  0x9e   :  { %v109_v15 = vpack.c.bf16 %v107_v14, %v107_v14 }
  0xa0   :  { %112 = vst.msk [vmem:[#allocation8] sm:$0xf] %vm111_vm1, %v109_v15 }
  0xa3   :  { %v102_v16 = vld [vmem:[#allocation2 + $0x8] sm:$0xff] }
  0xa4   :  { %v108_v17 = vadd.f32 %v153_v10, %v102_v16 }
  0xa6   :  { %v110_v18 = vpack.c.bf16 %v108_v17, %v108_v17 }
  0xa8   :  { %113 = vst.msk [vmem:[#allocation8 + $0x4] sm:$0xf] %vm111_vm1, %v110_v18 }
  0xa9   :  { %126 = dma.vmem_to_hbm [thread:$0]  %s119_s27, 128, %s121_s30, [#allocation5], %s236_s24, %s236_s24, %s237_s25  }
  0xaa   :  { %230 = dma.done.wait [#allocation5], 128  }
  0xab   :  { %231 = vsyncadd [#allocation5], 4294967168 }
  0xac   :  { %131 = vsyncpa [#allocation4], 1 }
  0xad   :  { %132 = vsyncpa [#allocation7], 1 }
  0xae   :  { %133 = vsyncpa [#allocation5], 1 }

</bundles_post_ra>
